<compile_context>
chip_gen: v6e
topology: v6e:2x2x1
jax: 0.10.0
libtpu: 0.0.40
codegen_flags: <defaults>
</compile_context>

<pallas_src>
import jax
import jax.numpy as jnp
from jax.experimental import pallas as pl
from jax.experimental.pallas import tpu as pltpu

_LANE = 128              # output last dim tile must be a multiple of this
_SUBLANE = 8             # second-to-last block dims must be multiples of this
_TQ_MAX = 512            # max query-tile rows (safe for v7x's 64 MiB VMEM)
_TK_MAX = 512            # max key-tile rows / output lane width
_VMEM_BUDGET = 8 * 1024 * 1024  # per-step working-set target (double-buffered)


def _round_up(x: int, m: int) -> int:
    return (x + m - 1) // m * m


def _largest_divisor_leq(n: int, cap: int) -> int:
    cap = max(1, min(n, cap))
    for d in range(cap, 0, -1):
        if n % d == 0:
            return d
    return 1


def _qk_kernel(q_ref, k_ref, o_ref):
    # q_ref: (BBLK, TQ, D), k_ref: (BBLK, TK, D), o_ref: (BBLK, TQ, TK)
    # Contract the last dim of both operands, batched over dim 0.  No k.T is
    # ever materialized (avoids an XLU transpose per step).
    s = jax.lax.dot_general(
        q_ref[...],
        k_ref[...],
        dimension_numbers=(((2,), (2,)), ((0,), (0,))),
        preferred_element_type=jnp.float32,
    )
    o_ref[...] = s.astype(o_ref.dtype)


def qk_multiply(q: jax.Array, k: jax.Array) -> jax.Array:
    """Computes q @ k.transpose(-2, -1) with a tiled Pallas TPU kernel.

    q: (..., Nq, D), k: (..., Nk, D)  ->  (..., Nq, Nk)
    """
    assert q.shape[:-2] == k.shape[:-2], "leading (batch) dims must match"
    assert q.shape[-1] == k.shape[-1], "head dims must match"

    batch_dims = q.shape[:-2]
    nq, d = q.shape[-2:]
    nk = k.shape[-2]
    bh = 1
    for s in batch_dims:
        bh *= s

    out_dtype = jnp.result_type(q.dtype, k.dtype)
    q2 = q.reshape(bh, nq, d).astype(out_dtype)
    k2 = k.reshape(bh, nk, d).astype(out_dtype)
    # TODO(synk): optionally cast q/k to bf16 here (keeping f32 accumulation)
    # when the caller can tolerate it; kept exact-dtype to match torch semantics.

    # ---- tile sizes --------------------------------------------------------
    nq_pad = _round_up(nq, _SUBLANE)
    if nq_pad > _TQ_MAX:
        tq = _TQ_MAX
        nq_pad = _round_up(nq, tq)
    else:
        tq = nq_pad

    # Lane-dense output: pad Nk to a multiple of 128 so stores are unmasked.
    nk_pad = _round_up(nk, _LANE)
    if nk_pad > _TK_MAX:
        tk = _TK_MAX
        nk_pad = _round_up(nk, tk)
    else:
        tk = nk_pad

    if nq_pad != nq:
        q2 = jnp.pad(q2, ((0, 0), (0, nq_pad - nq), (0, 0)))
    if nk_pad != nk:
        k2 = jnp.pad(k2, ((0, 0), (0, nk_pad - nk), (0, 0)))

    # ---- batch-head blocking (amortize per-step overhead on small seqs) ----
    itemsize = jnp.dtype(out_dtype).itemsize
    per_head_bytes = 2 * ((tq + tk) * d * itemsize + tq * tk * itemsize)
    bblk_cap = max(1, _VMEM_BUDGET // per_head_bytes)
    n_qk_tiles = (nq_pad // tq) * (nk_pad // tk)
    if n_qk_tiles == 1 and bh >= 2:
        # Keep at least 2 grid steps so v7x's two TensorCores both get work.
        bblk_cap = min(bblk_cap, max(1, bh // 2))
    bblk = _largest_divisor_leq(bh, bblk_cap)

    grid = (bh // bblk, nq_pad // tq, nk_pad // tk)

    cost = pl.CostEstimate(
        flops=2 * bh * nq_pad * nk_pad * d,
        transcendentals=0,
        bytes_accessed=(q2.size + k2.size) * itemsize
        + bh * nq_pad * nk_pad * itemsize,
    )

    out = pl.pallas_call(
        _qk_kernel,
        out_shape=jax.ShapeDtypeStruct((bh, nq_pad, nk_pad), out_dtype),
        grid_spec=pltpu.PrefetchScalarGridSpec(
            num_scalar_prefetch=0,
            grid=grid,
            in_specs=[
                pl.BlockSpec((bblk, tq, d), lambda b, qi, ki: (b, qi, 0)),
                pl.BlockSpec((bblk, tk, d), lambda b, qi, ki: (b, ki, 0)),
            ],
            out_specs=pl.BlockSpec((bblk, tq, tk), lambda b, qi, ki: (b, qi, ki)),
        ),
        compiler_params=pltpu.CompilerParams(
            dimension_semantics=("parallel", "parallel", "parallel"),
        ),
        cost_estimate=cost,
    )(q2, k2)

    # Padded rows/cols carry garbage logits -> slice them off before returning.
    out = out[:, :nq, :nk]
    return out.reshape(*batch_dims, nq, nk)


if __name__ == "__main__":
    key = jax.random.PRNGKey(0)
    kq, kk = jax.random.split(key)

    # Small attention-style shape: batch=2, heads=4, seq=8, head_dim=32.
    B, H, N, D = 2, 4, 8, 32
    q = jax.random.normal(kq, (B, H, N, D), dtype=jnp.float32)
    k = jax.random.normal(kk, (B, H, N, D), dtype=jnp.float32)

    out = jax.block_until_ready(qk_multiply(q, k))
    ref = jnp.einsum("bhqd,bhkd->bhqk", q, k)
    assert out.shape == (B, H, N, N)
    assert jnp.allclose(out, ref, atol=1e-3, rtol=1e-3)

    # ViT-style non-128-multiple sequence (exercises the pad/slice path).
    kq2, kk2 = jax.random.split(kk)
    B2, H2, N2, D2 = 1, 2, 197, 64
    q_b = jax.random.normal(kq2, (B2, H2, N2, D2), dtype=jnp.float32)
    k_b = jax.random.normal(kk2, (B2, H2, N2, D2), dtype=jnp.float32)
    out_b = jax.block_until_ready(qk_multiply(q_b, k_b))
    ref_b = jnp.einsum("bhqd,bhkd->bhqk", q_b, k_b)
    assert out_b.shape == (B2, H2, N2, N2)
    assert jnp.allclose(out_b, ref_b, atol=1e-3, rtol=1e-3)

    print("KERNEL_OK")
</pallas_src>

<mosaic_0001>
module attributes {stable_mosaic.version = 11 : i64} {
  func.func @_qk_kernel(%arg0: i32, %arg1: i32, %arg2: i32, %arg3: memref<4x8x32xf32, #tpu.memory_space<vmem>>, %arg4: memref<4x128x32xf32, #tpu.memory_space<vmem>>, %arg5: memref<4x8x128xf32, #tpu.memory_space<vmem>>) attributes {dimension_semantics = [#tpu.dimension_semantics<parallel>, #tpu.dimension_semantics<parallel>, #tpu.dimension_semantics<parallel>], iteration_bounds = array<i64: 2, 1, 1>, scalar_prefetch = 0 : i64, scratch_operands = 0 : i64, tpu.core_type = #tpu.core_type<tc>, window_params = [{transform_indices = @transform_0, window_bounds = array<i64: 4, 8, 32>}, {transform_indices = @transform_1, window_bounds = array<i64: 4, 128, 32>}, {transform_indices = @transform_2, window_bounds = array<i64: 4, 8, 128>}]} {
    %c0 = arith.constant 0 : index
    %c0_0 = arith.constant 0 : index
    %c0_1 = arith.constant 0 : index
    %0 = vector.load %arg3[%c0, %c0_0, %c0_1] : memref<4x8x32xf32, #tpu.memory_space<vmem>>, vector<4x8x32xf32>
    %c0_2 = arith.constant 0 : index
    %c0_3 = arith.constant 0 : index
    %c0_4 = arith.constant 0 : index
    %1 = vector.load %arg4[%c0_2, %c0_3, %c0_4] : memref<4x128x32xf32, #tpu.memory_space<vmem>>, vector<4x128x32xf32>
    %cst = arith.constant dense<0.000000e+00> : vector<4x8x128xf32>
    %2 = tpu.matmul %0, %1, %cst {dimension_numbers = #tpu.dot_dimension_numbers<[2], [2], [1], [1], [0, 0, 0, 1, 1, 1], [0], [0]>} : vector<4x8x32xf32>, vector<4x128x32xf32>, vector<4x8x128xf32> -> vector<4x8x128xf32>
    %c0_5 = arith.constant 0 : index
    %c0_6 = arith.constant 0 : index
    %c0_7 = arith.constant 0 : index
    %3 = vector.load %arg5[%c0_5, %c0_6, %c0_7] : memref<4x8x128xf32, #tpu.memory_space<vmem>>, vector<4x8x128xf32>
    tpu.vector_store %arg5[%c0_5, %c0_6, %c0_7], %2 {strides = array<i32>} : memref<4x8x128xf32, #tpu.memory_space<vmem>>, vector<4x8x128xf32>,
    return
  }
  func.func @transform_0(%arg0: i32, %arg1: i32, %arg2: i32) -> (i32, i32, i32) {
    %c0_i32 = arith.constant 0 : i32
    %c0_i32_0 = arith.constant 0 : i32
    return %arg0, %arg1, %c0_i32 : i32, i32, i32
  }
  func.func @transform_1(%arg0: i32, %arg1: i32, %arg2: i32) -> (i32, i32, i32) {
    %c0_i32 = arith.constant 0 : i32
    %c0_i32_0 = arith.constant 0 : i32
    return %arg0, %arg2, %c0_i32 : i32, i32, i32
  }
  func.func @transform_2(%arg0: i32, %arg1: i32, %arg2: i32) -> (i32, i32, i32) {
    %c0_i32 = arith.constant 0 : i32
    return %arg0, %arg1, %arg2 : i32, i32, i32
  }
}

</mosaic_0001>

<bundles_post_ra>
// kernel: tpu_custom_call.1
= control target key start
LH: loop header
LB: loop body
LE: loop exit
PB: predicated region body
PF: predicated region fallthrough
CT: control target
= control target key end

     0   :  { %7 = vsyncpa [#allocation3], 0  ;;  %s1673_s0 = inlined_call_operand.vmem [shape: f32[8,8,32], index: 0, kind: input, shape index: {}]   ;;  %s1674_s1 = inlined_call_operand.vmem [shape: f32[8,128,32], index: 1, kind: input, shape index: {}]   ;;  %s1675_s2 = inlined_call_operand.hbm [shape: f32[8,8,128], index: 2, kind: output, shape index: {}]  }
   0x1   :  { %9 = vsyncpa [#allocation3 + $0x1], 0  ;;  %s1341_s9 = smov 0   ;;  %s1343_s10 = smov 0  }
   0x2   :  { %s1345_s11 = smov 0   ;;  %s1347_s12 = smov 0  }
   0x3   :  { %s1349_s13 = smov 0   ;;  %s1351_s14 = smov 0  }
   0x4 LB: > { %s890_s15 = sadd.s32 4294967295, %s1319_s14   ;;  %s891_s16 = sadd.s32 4294967294, %s1319_s14   ;;  %s1319_s14 = sphi %s1351_s14, %s15_s14   ;;  %s1315_s13 = sphi %s1349_s13, %s1682_s13   ;;  %s1311_s12 = sphi %s1347_s12, %s1681_s12   ;;  %s1307_s11 = sphi %s1345_s11, %s1680_s11   ;;  %s1303_s10 = sphi %s1343_s10, %s1679_s10   ;;  %s1299_s9 = sphi %s1341_s9, %s1678_s9  }
   0x5   : > { %s34_s17 = sadd.s32 1, %s1315_s13  ;;  %s101_s18 = sadd.s32 1, %s1307_s11 }
   0x6   : > { %p36_p0 = scmp.ge.s32.totalorder %s34_s17, 2  ;;  %p111_p1 = scmp.ne.s32.totalorder %s1307_s11, %s1303_s10 }
   0x7   : > { %p112_p2 = scmp.eq.s32.totalorder %s890_s15, 1  ;;  %p117_p3 = scmp.ne.s32.totalorder %s1303_s10, %s1299_s9 }
   0x8   : > { %s1684_s17 = smov (%p36_p0, %s34_s17), 0  ;;  %p118_p5 = scmp.eq.s32.totalorder %s891_s16, 1 }
   0x9   : > { %p1381_p4 = por %p112_p2, %p111_p1  ;;  %s94_s20 = ssub.s32 %s1315_s13, %s1684_s17 }
   0xa   : > { %p894_p6 = scmp.ge.s32.totalorder %s1319_s14, 1  ;;  %p99_p7 = scmp.eq.s32.totalorder %s94_s20, 0 }
   0xb   : > { %p1388_p8 = por %p118_p5, %p117_p3  ;;  %p163_p9 = scmp.lt.s32.totalorder %s1319_s14, 3 }
   0xc   : > { %s1394_s22 = scalar_select %p99_p7, %s1307_s11, %s101_s18  }
   0xd   : > { %p164_p10 = pnand %p894_p6, %p163_p9 }
   0xe   : > { %s896_s23 = sshll.u32 (!%p164_p10), %s1311_s12, 2  ;;  %s195_s4 = sand.u32 (!%p164_p10), 1, %s1303_s10  }
   0xf   : > { %167 = sbr.rel (%p164_p10) target bundleno = 360 (0x168), region = 28  ;;  %p199_p11 = scmp.lt.s32.totalorder (!%p164_p10), %s896_s23, 7 }
  0x10   : > { %s895_s5 = sshll.u32 (!%p164_p10), %s195_s4, 5  ;;  %s975_s8 = sshll.u32 (!%p164_p10), %s1311_s12, 9 }
  0x11   : > { %s197_s6 = scalar_lea.vmem (!%p164_p10), [#allocation2], %s895_s5  ;;  %s1626_s18 = scalar_lea.hbm (!%p164_p10), %s1675_s2, %s975_s8 }
  0x12   : > { %s793_s7 = sshll.u32 (!%p164_p10), %s197_s6, 4  ;;  %s1628_s20 = scalar_lea.sflag (!%p164_p10), [#allocation3], %s195_s4  ;;  %s1621_s7 = int_to_ptr.vmem [resolvable:$true] %s793_s7 }
  0x13   : > { %s1323_s12 = smov (!%p164_p10), [#allocation2]  }
  0x14   : > { %v1321_v0 = vmov 0.0   ;;  %vm1322_vm0 = vmmov 0   ;;  %s1686_s23 = smov (!%p199_p11, %s896_s23), 7  ;;  %vm288_vm1 = vcmask 261120  }
  0x15   : > { %1044 = vmatprep.subr.mxu0 %v1321_v0  ;;  %1079 = vmatprep.subr.mxu1 %v1321_v0  ;;  %s974_s24 = sshll.u32 %s1686_s23, 7  ;;  %s897_s28 = sshll.u32 %s1686_s23, 3 }
  0x16   : > { %1076 = vmatprep.mubr.msk.f32.mxu0 %vm1322_vm0, %v1321_v0  ;;  %1111 = vmatprep.mubr.msk.f32.mxu1 %vm1322_vm0, %v1321_v0  ;;  %s1409_s27 = scalar_lea.vmem %s1674_s1, %s974_s24  ;;  %s1507_s3 = scalar_lea.vmem %s1673_s0, %s897_s28 }
  0x17   : > { %v239_v1 = vld [vmem:[%s1409_s27 + $0x78] sm:$0xff]  ;;  %v238_v3 = vld [vmem:[%s1409_s27 + $0x70] sm:$0xff]  ;;  %v237_v5 = vld [vmem:[%s1409_s27 + $0x68] sm:$0xff]  ;;  %s1243_s23 = scalar_lea.vmem %s1621_s7, 512  ;;  %s1247_s24 = sshll.u32 %s1323_s12, 4  ;;  %s1248_s24 = int_to_ptr.vmem [resolvable:$false] %s1247_s24 }
  0x18   : > { %v255_v2 = vld [vmem:[%s1409_s27 + $0xf8] sm:$0xff]  ;;  %1045 = vmatpush3.xpose.msk.msra.mxu0 %vm288_vm1, %v239_v1  ;;  %v254_v4 = vld [vmem:[%s1409_s27 + $0xf0] sm:$0xff]  ;;  %v253_v6 = vld [vmem:[%s1409_s27 + $0xe8] sm:$0xff]  ;;  %p1244_p12 = scmp.ne.s32.totalorder %s1621_s7, %s1243_s23  ;;  %s1249_s25 = scalar_lea.vmem %s1248_s24, 1024 }
  0x19   : > { %1080 = vmatpush3.xpose.msk.msra.mxu1 %vm288_vm1, %v255_v2  ;;  %1046 = vmatprep.subr.mxu0 %v1321_v0  ;;  %v236_v7 = vld [vmem:[%s1409_s27 + $0x60] sm:$0xff]  ;;  %v235_v9 = vld [vmem:[%s1409_s27 + $0x58] sm:$0xff]  ;;  %v234_v11 = vld [vmem:[%s1409_s27 + $0x50] sm:$0xff]  ;;  %p1250_p1 = scmp.lt.s32.totalorder %s1621_s7, %s1248_s24  ;;  %p1251_p2 = scmp.lt.s32.totalorder %s1249_s25, %s1243_s23 }
  0x1a   : > { %1081 = vmatprep.subr.mxu1 %v1321_v0  ;;  %v252_v8 = vld [vmem:[%s1409_s27 + $0xe0] sm:$0xff]  ;;  %v251_v10 = vld [vmem:[%s1409_s27 + $0xd8] sm:$0xff]  ;;  %v250_v12 = vld [vmem:[%s1409_s27 + $0xd0] sm:$0xff]  ;;  %p1245_p13 = pnand %p1244_p12, %p1381_p4 }
  0x1b   : > { %v233_v13 = vld [vmem:[%s1409_s27 + $0x48] sm:$0xff]  ;;  %v232_v15 = vld [vmem:[%s1409_s27 + $0x40] sm:$0xff]  ;;  %v231_v17 = vld [vmem:[%s1409_s27 + $0x38] sm:$0xff]  ;;  %p1252_p3 = por %p1251_p2, %p1250_p1 }
  0x1c   : > { %1047 = vmatpush3.xpose.msk.msra.mxu0 %vm288_vm1, %v238_v3  ;;  %v249_v14 = vld [vmem:[%s1409_s27 + $0xc8] sm:$0xff]  ;;  %v248_v16 = vld [vmem:[%s1409_s27 + $0xc0] sm:$0xff]  ;;  %v247_v18 = vld [vmem:[%s1409_s27 + $0xb8] sm:$0xff]  ;;  %p1246_p0 = pneg %p1245_p13 }
  0x1d   : > { %1082 = vmatpush3.xpose.msk.msra.mxu1 %vm288_vm1, %v254_v4  ;;  %1048 = vmatprep.subr.mxu0 %v1321_v0  ;;  %v230_v19 = vld [vmem:[%s1409_s27 + $0x30] sm:$0xff]  ;;  %v229_v21 = vld [vmem:[%s1409_s27 + $0x28] sm:$0xff]  ;;  %v228_v23 = vld [vmem:[%s1409_s27 + $0x20] sm:$0xff] }
  0x1e   : > { %1083 = vmatprep.subr.mxu1 %v1321_v0  ;;  %v246_v20 = vld [vmem:[%s1409_s27 + $0xb0] sm:$0xff]  ;;  %v245_v22 = vld [vmem:[%s1409_s27 + $0xa8] sm:$0xff]  ;;  %v244_v24 = vld [vmem:[%s1409_s27 + $0xa0] sm:$0xff]  ;;  %p1253_p5 = pnand %p1252_p3, %p1246_p0 }
  0x1f   : > { %v227_v25 = vld [vmem:[%s1409_s27 + $0x18] sm:$0xff]  ;;  %v226_v27 = vld [vmem:[%s1409_s27 + $0x10] sm:$0xff]  ;;  %v225_v29 = vld [vmem:[%s1409_s27 + $0x8] sm:$0xff] }
  0x20   : > { %1049 = vmatpush3.xpose.msk.msra.mxu0 %vm288_vm1, %v237_v5  ;;  %v243_v26 = vld [vmem:[%s1409_s27 + $0x98] sm:$0xff]  ;;  %v242_v28 = vld [vmem:[%s1409_s27 + $0x90] sm:$0xff]  ;;  %v241_v30 = vld [vmem:[%s1409_s27 + $0x88] sm:$0xff] }
  0x21   : > { %1084 = vmatpush3.xpose.msk.msra.mxu1 %vm288_vm1, %v253_v6  ;;  %1050 = vmatprep.subr.mxu0 %v1321_v0  ;;  %v224_v31 = vld [vmem:[%s1409_s27] sm:$0xff]  ;;  %v221_v34 = vld [vmem:[%s1507_s3 + $0x8] sm:$0xff]  ;;  %v271_v35 = vld [vmem:[%s1409_s27 + $0x178] sm:$0xff] }
  0x22   : > { %1085 = vmatprep.subr.mxu1 %v1321_v0  ;;  %v240_v32 = vld [vmem:[%s1409_s27 + $0x80] sm:$0xff]  ;;  %v287_v36 = vld [vmem:[%s1409_s27 + $0x1f8] sm:$0xff]  ;;  %v270_v37 = vld [vmem:[%s1409_s27 + $0x170] sm:$0xff] }
  0x23   : > { %v220_v33 = vld [vmem:[%s1507_s3] sm:$0xff]  ;;  %v286_v38 = vld [vmem:[%s1409_s27 + $0x1f0] sm:$0xff]  ;;  %v269_v39 = vld [vmem:[%s1409_s27 + $0x168] sm:$0xff] }
  0x24   : > { %1051 = vmatpush3.xpose.msk.msra.mxu0 %vm288_vm1, %v236_v7  ;;  %v285_v40 = vld [vmem:[%s1409_s27 + $0x1e8] sm:$0xff]  ;;  %v268_v41 = vld [vmem:[%s1409_s27 + $0x160] sm:$0xff]  ;;  %v267_v43 = vld [vmem:[%s1409_s27 + $0x158] sm:$0xff] }
  0x25   : > { %1086 = vmatpush3.xpose.msk.msra.mxu1 %vm288_vm1, %v252_v8  ;;  %1052 = vmatprep.subr.mxu0 %v1321_v0  ;;  %v284_v42 = vld [vmem:[%s1409_s27 + $0x1e0] sm:$0xff]  ;;  %v283_v44 = vld [vmem:[%s1409_s27 + $0x1d8] sm:$0xff]  ;;  %v266_v45 = vld [vmem:[%s1409_s27 + $0x150] sm:$0xff] }
  0x26   : > { %1087 = vmatprep.subr.mxu1 %v1321_v0  ;;  %v282_v46 = vld [vmem:[%s1409_s27 + $0x1d0] sm:$0xff]  ;;  %v265_v47 = vld [vmem:[%s1409_s27 + $0x148] sm:$0xff]  ;;  %v264_v49 = vld [vmem:[%s1409_s27 + $0x140] sm:$0xff] }
  0x27   : > { %v281_v48 = vld [vmem:[%s1409_s27 + $0x1c8] sm:$0xff]  ;;  %v280_v50 = vld [vmem:[%s1409_s27 + $0x1c0] sm:$0xff]  ;;  %v263_v51 = vld [vmem:[%s1409_s27 + $0x138] sm:$0xff] }
  0x28   : > { %1053 = vmatpush3.xpose.msk.msra.mxu0 %vm288_vm1, %v235_v9  ;;  %v279_v52 = vld [vmem:[%s1409_s27 + $0x1b8] sm:$0xff]  ;;  %v262_v53 = vld [vmem:[%s1409_s27 + $0x130] sm:$0xff]  ;;  %v261_v55 = vld [vmem:[%s1409_s27 + $0x128] sm:$0xff] }
  0x29   : > { %1088 = vmatpush3.xpose.msk.msra.mxu1 %vm288_vm1, %v251_v10  ;;  %1054 = vmatprep.subr.mxu0 %v1321_v0  ;;  %v278_v54 = vld [vmem:[%s1409_s27 + $0x1b0] sm:$0xff]  ;;  %v277_v56 = vld [vmem:[%s1409_s27 + $0x1a8] sm:$0xff]  ;;  %v260_v57 = vld [vmem:[%s1409_s27 + $0x120] sm:$0xff] }
  0x2a   : > { %1089 = vmatprep.subr.mxu1 %v1321_v0  ;;  %v276_v58 = vld [vmem:[%s1409_s27 + $0x1a0] sm:$0xff]  ;;  %v259_v59 = vld [vmem:[%s1409_s27 + $0x118] sm:$0xff]  ;;  %v258_v61 = vld [vmem:[%s1409_s27 + $0x110] sm:$0xff] }
  0x2b   : > { %v275_v60 = vld [vmem:[%s1409_s27 + $0x198] sm:$0xff]  ;;  %v274_v62 = vld [vmem:[%s1409_s27 + $0x190] sm:$0xff]  ;;  %v257_v63 = vld [vmem:[%s1409_s27 + $0x108] sm:$0xff] }
  0x2c   : > { %1055 = vmatpush3.xpose.msk.msra.mxu0 %vm288_vm1, %v234_v11  ;;  %v273_v1 = vld [vmem:[%s1409_s27 + $0x188] sm:$0xff]  ;;  %v256_v2 = vld [vmem:[%s1409_s27 + $0x100] sm:$0xff]  ;;  %v222_v4 = vld [vmem:[%s1507_s3 + $0x10] sm:$0xff] }
  0x2d   : > { %1090 = vmatpush3.xpose.msk.msra.mxu1 %vm288_vm1, %v250_v12  ;;  %1056 = vmatprep.subr.mxu0 %v1321_v0  ;;  %v272_v3 = vld [vmem:[%s1409_s27 + $0x180] sm:$0xff]  ;;  %v223_v5 = vld [vmem:[%s1507_s3 + $0x18] sm:$0xff] }
  0x2e   : > { %1091 = vmatprep.subr.mxu1 %v1321_v0 }
  0x30   : > { %1057 = vmatpush3.xpose.msk.msra.mxu0 %vm288_vm1, %v233_v13 }
  0x31   : > { %1092 = vmatpush3.xpose.msk.msra.mxu1 %vm288_vm1, %v249_v14  ;;  %1058 = vmatprep.subr.mxu0 %v1321_v0 }
  0x32   : > { %1093 = vmatprep.subr.mxu1 %v1321_v0 }
  0x34   : > { %1059 = vmatpush3.xpose.msk.msra.mxu0 %vm288_vm1, %v232_v15 }
  0x35   : > { %1094 = vmatpush3.xpose.msk.msra.mxu1 %vm288_vm1, %v248_v16  ;;  %1060 = vmatprep.subr.mxu0 %v1321_v0 }
  0x36   : > { %1095 = vmatprep.subr.mxu1 %v1321_v0 }
  0x38   : > { %1061 = vmatpush3.xpose.msk.msra.mxu0 %vm288_vm1, %v231_v17 }
  0x39   : > { %1096 = vmatpush3.xpose.msk.msra.mxu1 %vm288_vm1, %v247_v18  ;;  %1062 = vmatprep.subr.mxu0 %v1321_v0 }
  0x3a   : > { %1097 = vmatprep.subr.mxu1 %v1321_v0 }
  0x3c   : > { %1063 = vmatpush3.xpose.msk.msra.mxu0 %vm288_vm1, %v230_v19 }
  0x3d   : > { %1098 = vmatpush3.xpose.msk.msra.mxu1 %vm288_vm1, %v246_v20  ;;  %1064 = vmatprep.subr.mxu0 %v1321_v0 }
  0x3e   : > { %1099 = vmatprep.subr.mxu1 %v1321_v0 }
  0x40   : > { %1065 = vmatpush3.xpose.msk.msra.mxu0 %vm288_vm1, %v229_v21 }
  0x41   : > { %1100 = vmatpush3.xpose.msk.msra.mxu1 %vm288_vm1, %v245_v22  ;;  %1066 = vmatprep.subr.mxu0 %v1321_v0 }
  0x42   : > { %1101 = vmatprep.subr.mxu1 %v1321_v0 }
  0x44   : > { %1067 = vmatpush3.xpose.msk.msra.mxu0 %vm288_vm1, %v228_v23 }
  0x45   : > { %1102 = vmatpush3.xpose.msk.msra.mxu1 %vm288_vm1, %v244_v24  ;;  %1068 = vmatprep.subr.mxu0 %v1321_v0 }
  0x46   : > { %1103 = vmatprep.subr.mxu1 %v1321_v0 }
  0x48   : > { %1069 = vmatpush3.xpose.msk.msra.mxu0 %vm288_vm1, %v227_v25 }
  0x49   : > { %1104 = vmatpush3.xpose.msk.msra.mxu1 %vm288_vm1, %v243_v26  ;;  %1070 = vmatprep.subr.mxu0 %v1321_v0 }
  0x4a   : > { %1105 = vmatprep.subr.mxu1 %v1321_v0 }
  0x4c   : > { %1071 = vmatpush3.xpose.msk.msra.mxu0 %vm288_vm1, %v226_v27 }
  0x4d   : > { %1106 = vmatpush3.xpose.msk.msra.mxu1 %vm288_vm1, %v242_v28  ;;  %1072 = vmatprep.subr.mxu0 %v1321_v0 }
  0x4e   : > { %1107 = vmatprep.subr.mxu1 %v1321_v0 }
  0x50   : > { %1073 = vmatpush3.xpose.msk.msra.mxu0 %vm288_vm1, %v225_v29 }
  0x51   : > { %1108 = vmatpush3.xpose.msk.msra.mxu1 %vm288_vm1, %v241_v30  ;;  %1074 = vmatprep.subr.mxu0 %v1321_v0 }
  0x52   : > { %1109 = vmatprep.subr.mxu1 %v1321_v0 }
  0x54   : > { %1075 = vmatpush3.xpose.msk.msra.mxu0 %vm288_vm1, %v224_v31 }
  0x55   : > { %1110 = vmatpush3.xpose.msk.msra.mxu1 %vm288_vm1, %v240_v32  ;;  %1114 = vmatprep.subr.mxu0 %v1321_v0 }
  0x56   : > { %1149 = vmatprep.subr.mxu1 %v1321_v0 }
  0x57   : > { %1077 = vmatmul.mubr.msk.f32.vlgmr.msra.gmra.mxu0 %vm288_vm1, %v220_v33 }
  0x58   : > { %1112 = vmatmul.mubr.msk.f32.vlgmr.msra.gmra.mxu1 %vm288_vm1, %v221_v34  ;;  %1115 = vmatpush3.xpose.msk.msra.mxu0 %vm288_vm1, %v271_v35 }
  0x59   : > { %1150 = vmatpush3.xpose.msk.msra.mxu1 %vm288_vm1, %v287_v36  ;;  %1116 = vmatprep.subr.mxu0 %v1321_v0 }
  0x5a   : > { %1151 = vmatprep.subr.mxu1 %v1321_v0  ;;  %1146 = vmatprep.mubr.msk.f32.mxu0 %vm1322_vm0, %v1321_v0 }
  0x5b   : > { %1181 = vmatprep.mubr.msk.f32.mxu1 %vm1322_vm0, %v1321_v0 }
  0x5c   : > { %1117 = vmatpush3.xpose.msk.msra.mxu0 %vm288_vm1, %v270_v37 }
  0x5d   : > { %1152 = vmatpush3.xpose.msk.msra.mxu1 %vm288_vm1, %v286_v38  ;;  %1118 = vmatprep.subr.mxu0 %v1321_v0 }
  0x5e   : > { %1153 = vmatprep.subr.mxu1 %v1321_v0 }
  0x60   : > { %1119 = vmatpush3.xpose.msk.msra.mxu0 %vm288_vm1, %v269_v39 }
  0x61   : > { %1154 = vmatpush3.xpose.msk.msra.mxu1 %vm288_vm1, %v285_v40  ;;  %1120 = vmatprep.subr.mxu0 %v1321_v0 }
  0x62   : > { %1155 = vmatprep.subr.mxu1 %v1321_v0 }
  0x64   : > { %1121 = vmatpush3.xpose.msk.msra.mxu0 %vm288_vm1, %v268_v41 }
  0x65   : > { %1156 = vmatpush3.xpose.msk.msra.mxu1 %vm288_vm1, %v284_v42  ;;  %1122 = vmatprep.subr.mxu0 %v1321_v0 }
  0x66   : > { %1157 = vmatprep.subr.mxu1 %v1321_v0 }
  0x68   : > { %1123 = vmatpush3.xpose.msk.msra.mxu0 %vm288_vm1, %v267_v43 }
  0x69   : > { %1158 = vmatpush3.xpose.msk.msra.mxu1 %vm288_vm1, %v283_v44  ;;  %1124 = vmatprep.subr.mxu0 %v1321_v0 }
  0x6a   : > { %1159 = vmatprep.subr.mxu1 %v1321_v0 }
  0x6c   : > { %1125 = vmatpush3.xpose.msk.msra.mxu0 %vm288_vm1, %v266_v45 }
  0x6d   : > { %1160 = vmatpush3.xpose.msk.msra.mxu1 %vm288_vm1, %v282_v46  ;;  %1126 = vmatprep.subr.mxu0 %v1321_v0 }
  0x6e   : > { %1161 = vmatprep.subr.mxu1 %v1321_v0 }
  0x70   : > { %1127 = vmatpush3.xpose.msk.msra.mxu0 %vm288_vm1, %v265_v47 }
  0x71   : > { %1162 = vmatpush3.xpose.msk.msra.mxu1 %vm288_vm1, %v281_v48  ;;  %1128 = vmatprep.subr.mxu0 %v1321_v0 }
  0x72   : > { %1163 = vmatprep.subr.mxu1 %v1321_v0 }
  0x74   : > { %1129 = vmatpush3.xpose.msk.msra.mxu0 %vm288_vm1, %v264_v49 }
  0x75   : > { %1164 = vmatpush3.xpose.msk.msra.mxu1 %vm288_vm1, %v280_v50  ;;  %1130 = vmatprep.subr.mxu0 %v1321_v0 }
  0x76   : > { %1165 = vmatprep.subr.mxu1 %v1321_v0 }
  0x78   : > { %1131 = vmatpush3.xpose.msk.msra.mxu0 %vm288_vm1, %v263_v51 }
  0x79   : > { %1166 = vmatpush3.xpose.msk.msra.mxu1 %vm288_vm1, %v279_v52  ;;  %1132 = vmatprep.subr.mxu0 %v1321_v0 }
  0x7a   : > { %1167 = vmatprep.subr.mxu1 %v1321_v0 }
  0x7c   : > { %1133 = vmatpush3.xpose.msk.msra.mxu0 %vm288_vm1, %v262_v53 }
  0x7d   : > { %1168 = vmatpush3.xpose.msk.msra.mxu1 %vm288_vm1, %v278_v54  ;;  %1134 = vmatprep.subr.mxu0 %v1321_v0 }
  0x7e   : > { %1169 = vmatprep.subr.mxu1 %v1321_v0 }
  0x80   : > { %1135 = vmatpush3.xpose.msk.msra.mxu0 %vm288_vm1, %v261_v55 }
  0x81   : > { %1170 = vmatpush3.xpose.msk.msra.mxu1 %vm288_vm1, %v277_v56  ;;  %1136 = vmatprep.subr.mxu0 %v1321_v0 }
  0x82   : > { %1171 = vmatprep.subr.mxu1 %v1321_v0 }
  0x84   : > { %1137 = vmatpush3.xpose.msk.msra.mxu0 %vm288_vm1, %v260_v57 }
  0x85   : > { %1172 = vmatpush3.xpose.msk.msra.mxu1 %vm288_vm1, %v276_v58  ;;  %1138 = vmatprep.subr.mxu0 %v1321_v0 }
  0x86   : > { %1173 = vmatprep.subr.mxu1 %v1321_v0 }
  0x88   : > { %1139 = vmatpush3.xpose.msk.msra.mxu0 %vm288_vm1, %v259_v59 }
  0x89   : > { %1174 = vmatpush3.xpose.msk.msra.mxu1 %vm288_vm1, %v275_v60  ;;  %1140 = vmatprep.subr.mxu0 %v1321_v0 }
  0x8a   : > { %1175 = vmatprep.subr.mxu1 %v1321_v0 }
  0x8c   : > { %1141 = vmatpush3.xpose.msk.msra.mxu0 %vm288_vm1, %v258_v61 }
  0x8d   : > { %1176 = vmatpush3.xpose.msk.msra.mxu1 %vm288_vm1, %v274_v62  ;;  %1142 = vmatprep.subr.mxu0 %v1321_v0 }
  0x8e   : > { %1177 = vmatprep.subr.mxu1 %v1321_v0 }
  0x90   : > { %1143 = vmatpush3.xpose.msk.msra.mxu0 %vm288_vm1, %v257_v63 }
  0x91   : > { %1178 = vmatpush3.xpose.msk.msra.mxu1 %vm288_vm1, %v273_v1  ;;  %1144 = vmatprep.subr.mxu0 %v1321_v0 }
  0x92   : > { %1179 = vmatprep.subr.mxu1 %v1321_v0 }
  0x94   : > { %1145 = vmatpush3.xpose.msk.msra.mxu0 %vm288_vm1, %v256_v2 }
  0x95   : > { %1180 = vmatpush3.xpose.msk.msra.mxu1 %vm288_vm1, %v272_v3 }
  0x97   : > { %1147 = vmatmul.mubr.msk.f32.vlgmr.msra.gmra.mxu0 %vm288_vm1, %v222_v4 }
  0x98   : > { %1182 = vmatmul.mubr.msk.f32.vlgmr.msra.gmra.mxu1 %vm288_vm1, %v223_v5 }
 0x117   : > { %v406_v6 = vpop.f32.mrf.mxu0 }
 0x118   : > { %v527_v7 = vpop.f32.mrf.mxu1  ;;  %773 = vst [vmem:[%s197_s6] sm:$0xff] %v406_v6 }
 0x119   : > { %774 = vst [vmem:[%s197_s6 + $0x8] sm:$0xff] %v527_v7  ;;  %v1078_v0 = vpop.f32.mrf.mxu0 }
 0x11a   : > { %v1113_v8 = vpop.f32.mrf.mxu1 }
 0x157   : > { %v648_v9 = vpop.f32.mrf.mxu0 }
 0x158   : > { %v769_v10 = vpop.f32.mrf.mxu1  ;;  %775 = vst [vmem:[%s197_s6 + $0x10] sm:$0xff] %v648_v9 }
 0x159   : > { %776 = vst [vmem:[%s197_s6 + $0x18] sm:$0xff] %v769_v10  ;;  %v1148_v11 = vpop.f32.mrf.mxu0 }
 0x15a   : > { %v1183_v12 = vpop.f32.mrf.mxu1 }
 0x15b   : > { %1256 = shalt.err (!%p1253_p5)
}
 0x15c   : > { %s1257_s26 = scalar_lea.hbm %s1626_s18, 512  ;;  %s1261_s29 = scalar_lea.hbm %s1675_s2, 1024 }
 0x15d   : > { %p1258_p6 = scmp.ne.s32.totalorder %s1626_s18, %s1257_s26  ;;  %p1262_p10 = scmp.lt.s32.totalorder %s1626_s18, %s1675_s2 }
 0x15e   : > { %p1263_p11 = scmp.lt.s32.totalorder %s1261_s29, %s1257_s26 }
 0x15f   : > { %p1259_p7 = pnand %p1258_p6, %p1381_p4 }
 0x160   : > { %p1264_p12 = por %p1263_p11, %p1262_p10 }
 0x161   : > { %p1260_p9 = pneg %p1259_p7 }
 0x163   : > { %p1265_p13 = pnand %p1264_p12, %p1260_p9 }
 0x165   : > { %1268 = shalt.err (!%p1265_p13)
}
 0x166   : > { %s1324_s4 = smov 128   ;;  %s1325_s5 = smov 8  }
 0x167   : > { %1184 = dma.vmem_to_hbm [thread:$0]  (%p1381_p4), %s1621_s7, 512, %s1626_s18, %s1628_s20, %s1324_s4, %s1324_s4, %s1325_s5  }
 0x168 PF: > { %p1190_p0 = scmp.ge.s32.totalorder %s1319_s14, 2  ;;  %s808_s6 = sand.u32 1, %s1299_s9  }
 0x169   : > { %s809_s8 = scalar_lea.sflag [#allocation3], %s808_s6 }
 0x16a   : > { %p1187_p1 = pnand %p1190_p0, %p1388_p8 }
 0x16c   : > { %p1188_p2 = pneg %p1187_p1 }
 0x16e   : > { %1294 = dma.done.wait (%p1188_p2), %s809_s8, 512  }
 0x16f   : > { %1296 = vsyncadd (%p1188_p2), %s809_s8, 4294966784  ;;  %s15_s14 = sadd.s32 1, %s1319_s14   ;;  %s1678_s9 = smov %s1303_s10 }
 0x170   : > { %p12_p3 = scmp.ge.s32.totalorder %s15_s14, 4   ;;  %s1679_s10 = smov %s1307_s11 }
 0x171   : > { %s1680_s11 = smov %s1394_s22  ;;  %s1681_s12 = smov %s1315_s13 }
 0x172   : > { %s1682_s13 = smov %s1684_s17  ;;  %14 = sbr.rel (!%p12_p3) target bundleno = 4 (0x4), region = 66 }
 0x177   :  { %814 = vsyncpa [#allocation3], 1 }
 0x178   :  { %816 = vsyncpa [#allocation3 + $0x1], 1 }

</bundles_post_ra>
